<compile_context>
chip_gen: v5e
topology: v5e:2x2
jax: 0.10.0
libtpu: 0.0.40
codegen_flags: <defaults>
</compile_context>

<pallas_src>
import functools
import math

import jax
import jax.numpy as jnp
from jax.experimental import pallas as pl
from jax.experimental.pallas import tpu as pltpu


def _round_up(v: int, m: int) -> int:
    return ((v + m - 1) // m) * m


# ---------------------------------------------------------------------------
# Static tiling plan (pure Python on static shape ints; shared by the one-time
# parameter fusion and the forward so they always agree).
# ---------------------------------------------------------------------------
_MAX_TD = 2048            # 2048 x 512 f32 weight tile = 4 MiB; 8 MiB dbl-buffered
_N_PAD_MAX_RATIO = 1.1    # only lane-pad N when the traffic amplification is small


def _plan_d(d: int):
    if d <= _MAX_TD:
        d_pad = _round_up(d, 8)        # sublane-friendly; single reduction step
        td = d_pad
    else:
        d_pad = _round_up(d, _MAX_TD)
        td = _MAX_TD
    return d_pad, td


def _plan_n(n: int):
    n128 = _round_up(n, 128)
    if n128 / n > _N_PAD_MAX_RATIO:
        # Padding would amplify weight HBM traffic (the roofline); keep the
        # natural width (full-extent last dim) and accept masked output stores.
        return n, n
    n_pad = n128
    if n_pad % 512 == 0 and n_pad >= 1024:
        tn = 512
    elif n_pad % 256 == 0 and n_pad >= 512:
        tn = 256
    else:
        tn = 128
    return n_pad, tn


# ---------------------------------------------------------------------------
# One-time parameter re-layout: do this at parameter-load time, NOT per call.
# ---------------------------------------------------------------------------
def fuse_ensemble_params(weights, biases, weight_dtype=None):
    """weights: [M, D, K], biases: [M, K] -> padded (w_fused [d_pad, n_pad],
    b_fused [1, n_pad]) with the ensemble dim fused into the matmul N dim."""
    m, d, k = weights.shape
    assert biases.shape == (m, k)
    n = m * k
    d_pad, _ = _plan_d(d)
    n_pad, _ = _plan_n(n)

    w_fused = jnp.transpose(weights, (1, 0, 2)).reshape(d, n)
    if weight_dtype is not None:
        w_fused = w_fused.astype(weight_dtype)
    b_fused = biases.reshape(1, n).astype(jnp.float32)
    if d_pad != d or n_pad != n:
        w_fused = jnp.pad(w_fused, ((0, d_pad - d), (0, n_pad - n)))
        b_fused = jnp.pad(b_fused, ((0, 0), (0, n_pad - n)))
    return w_fused, b_fused


# ---------------------------------------------------------------------------
# Kernel: out(B, tn) is resident across the reduction axis; init with bias at
# d == 0 and accumulate the per-d-tile matmul directly into it (f32).
# ---------------------------------------------------------------------------
def _make_kernel(x_resident: bool, td: int):
    def kernel(x_ref, w_ref, b_ref, o_ref):
        d = pl.program_id(1)

        @pl.when(d == 0)
        def _():
            o_ref[...] = jnp.broadcast_to(b_ref[...], o_ref.shape)

        if x_resident:
            start = pl.multiple_of(d * td, td)
            x_blk = x_ref[:, pl.ds(start, td)]
        else:
            x_blk = x_ref[...]

        o_ref[...] += jnp.dot(x_blk, w_ref[...],
                              preferred_element_type=jnp.float32)

    return kernel


# ---------------------------------------------------------------------------
# Forward (jitted). Matches torch.stack([model(x) for model in ensemble], 1).
# ---------------------------------------------------------------------------
@functools.partial(jax.jit, static_argnames=("m", "k"))
def detectron_ensemble_forward(x_nchw, w_fused, b_fused, *, m, k):
    """x_nchw: [B, C, H, W]; w_fused/b_fused from fuse_ensemble_params.
    Returns [B, M, K]."""
    b = x_nchw.shape[0]
    d = math.prod(x_nchw.shape[1:])
    n = m * k

    d_pad, td = _plan_d(d)
    n_pad, tn = _plan_n(n)
    assert w_fused.shape == (d_pad, n_pad), (w_fused.shape, (d_pad, n_pad))
    assert b_fused.shape == (1, n_pad), b_fused.shape

    n_tiles = n_pad // tn
    d_tiles = d_pad // td

    x_flat = x_nchw.reshape(b, d)
    if d_pad != d:
        x_flat = jnp.pad(x_flat, ((0, 0), (0, d_pad - d)))
    # Match the (possibly narrower) weight dtype so the MXU runs a single-dtype
    # matmul; accumulation stays f32 via preferred_element_type.
    x_flat = x_flat.astype(w_fused.dtype)

    # Keep x resident in VMEM (one DMA for the whole kernel) when it is small;
    # otherwise fall back to per-reduction-step tiles.
    x_resident = b * d_pad * x_flat.dtype.itemsize <= 4 * 1024 * 1024
    if x_resident:
        x_spec = pl.BlockSpec((b, d_pad), lambda ni, di: (0, 0))
    else:
        x_spec = pl.BlockSpec((b, td), lambda ni, di: (0, di))

    out_padded = pl.pallas_call(
        _make_kernel(x_resident, td),
        out_shape=jax.ShapeDtypeStruct((b, n_pad), jnp.float32),
        grid=(n_tiles, d_tiles),                    # reduction axis last
        in_specs=[
            x_spec,                                              # activations
            pl.BlockSpec((td, tn), lambda ni, di: (di, ni)),     # fused weights
            pl.BlockSpec((1, tn), lambda ni, di: (0, ni)),       # fused bias
        ],
        out_specs=pl.BlockSpec((b, tn), lambda ni, di: (0, ni)),
        compiler_params=pltpu.CompilerParams(
            dimension_semantics=("parallel", "arbitrary"),
        ),
    )(x_flat, w_fused, b_fused)

    # Slice off lane padding (no-op when n_pad == n); the reshape of the
    # contiguous (B, M*K) slab is torch.stack(dim=1) -> [B, M, K] for free.
    return out_padded[:, :n].reshape(b, m, k)

    # TODO(synk): if B grows beyond a handful, add a batch grid axis tiled to
    # the native MXU height; at B=2 the kernel is weight-BW bound so B is left
    # as a full-extent dim.


def _reference(x_nchw, weights, biases):
    b = x_nchw.shape[0]
    x_flat = x_nchw.reshape(b, -1)
    return jnp.stack(
        [x_flat @ weights[i] + biases[i] for i in range(weights.shape[0])],
        axis=1,
    )


if __name__ == "__main__":
    # batch=2, channels=4, 16x16 spatial; ensemble of M=3 members (base model
    # + 2 detectors), K=8 output classes.
    # TODO(synk): arbitrary base_model / detector architectures (and the
    # checkpoint-loading classmethod) have no generic Pallas equivalent;
    # ensemble members are modeled as linear classifiers here.
    B, C, H, W = 2, 4, 16, 16
    D = C * H * W
    M, K = 3, 8

    key = jax.random.PRNGKey(0)
    kx, kw, kb = jax.random.split(key, 3)

    x = jax.random.normal(kx, (B, C, H, W), dtype=jnp.float32)
    weights = jax.random.normal(kw, (M, D, K), dtype=jnp.float32) * 0.02
    biases = jax.random.normal(kb, (M, K), dtype=jnp.float32) * 0.1

    ref = _reference(x, weights, biases)

    # One-time parameter re-layout (hoisted out of the per-call forward path).
    w_fused, b_fused = fuse_ensemble_params(weights, biases)
    out = detectron_ensemble_forward(x, w_fused, b_fused, m=M, k=K)
    out = jax.block_until_ready(out)
    assert out.shape == (B, M, K), out.shape
    assert jnp.allclose(out, ref, atol=1e-4, rtol=1e-4), "f32 mismatch vs reference"

    # Optional narrow-weight path (halves weight HBM bytes; f32 accumulation).
    w_bf16, b_bf16 = fuse_ensemble_params(weights, biases, weight_dtype=jnp.bfloat16)
    out_bf16 = jax.block_until_ready(
        detectron_ensemble_forward(x, w_bf16, b_bf16, m=M, k=K)
    )
    assert jnp.allclose(out_bf16, ref, atol=1e-1, rtol=1e-1), "bf16 mismatch vs reference"

    print("KERNEL_OK")
</pallas_src>

<mosaic_0001>
module attributes {stable_mosaic.version = 11 : i64} {
  func.func @kernel(%arg0: i32, %arg1: i32, %arg2: memref<2x1024xf32, #tpu.memory_space<vmem>>, %arg3: memref<1024x24xf32, #tpu.memory_space<vmem>>, %arg4: memref<1x24xf32, #tpu.memory_space<vmem>>, %arg5: memref<2x24xf32, #tpu.memory_space<vmem>>) attributes {dimension_semantics = [#tpu.dimension_semantics<parallel>, #tpu.dimension_semantics<arbitrary>], iteration_bounds = array<i64: 1, 1>, scalar_prefetch = 0 : i64, scratch_operands = 0 : i64, tpu.core_type = #tpu.core_type<tc>, window_params = [{pipeline_mode = #tpu.pipeline_mode<synchronous>, transform_indices = @transform_0, window_bounds = array<i64: 2, 1024>}, {transform_indices = @transform_1, window_bounds = array<i64: 1024, 24>}, {transform_indices = @transform_2, window_bounds = array<i64: 1, 24>}, {transform_indices = @transform_3, window_bounds = array<i64: 2, 24>}]} {
    %c0_i32 = arith.constant 0 : i32
    %0 = arith.cmpi eq, %arg1, %c0_i32 : i32
    %1 = arith.extui %0 : i1 to i32
    %c0_i32_0 = arith.constant 0 : i32
    %2 = arith.cmpi ne, %1, %c0_i32_0 : i32
    scf.if %2 {
      %c0_7 = arith.constant 0 : index
      %c0_8 = arith.constant 0 : index
      %12 = vector.load %arg4[%c0_7, %c0_8] : memref<1x24xf32, #tpu.memory_space<vmem>>, vector<1x24xf32>
      %13 = vector.shape_cast %12 : vector<1x24xf32> to vector<1x24xf32>
      %14 = vector.broadcast %13 : vector<1x24xf32> to vector<2x24xf32>
      %c0_9 = arith.constant 0 : index
      %c0_10 = arith.constant 0 : index
      %15 = vector.load %arg5[%c0_9, %c0_10] : memref<2x24xf32, #tpu.memory_space<vmem>>, vector<2x24xf32>
      tpu.vector_store %arg5[%c0_9, %c0_10], %14 {strides = array<i32>} : memref<2x24xf32, #tpu.memory_space<vmem>>, vector<2x24xf32>,
    } else {
    }
    %c1024_i32 = arith.constant 1024 : i32
    %3 = arith.muli %arg1, %c1024_i32 : i32
    %4 = tpu.assume_multiple %3, 1024 : i32
    %c0 = arith.constant 0 : index
    %5 = arith.index_cast %4 : i32 to index
    %6 = vector.load %arg2[%c0, %5] : memref<2x1024xf32, #tpu.memory_space<vmem>>, vector<2x1024xf32>
    %c0_1 = arith.constant 0 : index
    %c0_2 = arith.constant 0 : index
    %7 = vector.load %arg5[%c0_1, %c0_2] : memref<2x24xf32, #tpu.memory_space<vmem>>, vector<2x24xf32>
    %c0_3 = arith.constant 0 : index
    %c0_4 = arith.constant 0 : index
    %8 = vector.load %arg3[%c0_3, %c0_4] : memref<1024x24xf32, #tpu.memory_space<vmem>>, vector<1024x24xf32>
    %cst = arith.constant dense<0.000000e+00> : vector<2x24xf32>
    %9 = tpu.matmul %6, %8, %cst {dimension_numbers = #tpu.dot_dimension_numbers<[1], [0], [0], [1], [0, 0, 1, 1], [], []>} : vector<2x1024xf32>, vector<1024x24xf32>, vector<2x24xf32> -> vector<2x24xf32>
    %10 = arith.addf %7, %9 : vector<2x24xf32>
    %c0_5 = arith.constant 0 : index
    %c0_6 = arith.constant 0 : index
    %11 = vector.load %arg5[%c0_5, %c0_6] : memref<2x24xf32, #tpu.memory_space<vmem>>, vector<2x24xf32>
    tpu.vector_store %arg5[%c0_5, %c0_6], %10 {strides = array<i32>} : memref<2x24xf32, #tpu.memory_space<vmem>>, vector<2x24xf32>,
    return
  }
  func.func @transform_0(%arg0: i32, %arg1: i32) -> (i32, i32) {
    %c0_i32 = arith.constant 0 : i32
    %c0_i32_0 = arith.constant 0 : i32
    %c0_i32_1 = arith.constant 0 : i32
    return %c0_i32, %c0_i32_0 : i32, i32
  }
  func.func @transform_1(%arg0: i32, %arg1: i32) -> (i32, i32) {
    %c0_i32 = arith.constant 0 : i32
    return %arg1, %arg0 : i32, i32
  }
  func.func @transform_2(%arg0: i32, %arg1: i32) -> (i32, i32) {
    %c0_i32 = arith.constant 0 : i32
    %c0_i32_0 = arith.constant 0 : i32
    return %c0_i32, %arg0 : i32, i32
  }
  func.func @transform_3(%arg0: i32, %arg1: i32) -> (i32, i32) {
    %c0_i32 = arith.constant 0 : i32
    %c0_i32_0 = arith.constant 0 : i32
    return %c0_i32, %arg0 : i32, i32
  }
}

</mosaic_0001>

<bundles_post_ra>
// kernel: detectron_ensemble_forward.1
= control target key start
LH: loop header
LB: loop body
LE: loop exit
PB: predicated region body
PF: predicated region fallthrough
CT: control target
= control target key end

     0   :  { %vm22_vm0 = vcmask 189440   ;;  %s775_s1 = inlined_call_operand.vmem [shape: f32[1024,24], index: 1, kind: input, shape index: {}]   ;;  %s776_s0 = inlined_call_operand.vmem [shape: f32[2,1024], index: 0, kind: input, shape index: {}]   ;;  %s777_s2 = inlined_call_operand.vmem [shape: f32[1,24], index: 2, kind: input, shape index: {}]   ;;  %s778_s3 = inlined_call_operand.vmem [shape: f32[2,24], index: 3, kind: output, shape index: {}]  }
   0x1   :  { %v47_v0 = vld [vmem:[%s775_s1 + $0x78] sm:$0xff]  ;;  %v46_v2 = vld [vmem:[%s775_s1 + $0x70] sm:$0xff]  ;;  %v45_v6 = vld [vmem:[%s775_s1 + $0x68] sm:$0xff] }
   0x2   :  { %v79_v1 = vld [vmem:[%s775_s1 + $0x178] sm:$0xff]  ;;  %181 = vmatpush.msra.mxu0 %v47_v0  ;;  %v78_v4 = vld [vmem:[%s775_s1 + $0x170] sm:$0xff]  ;;  %v77_v8 = vld [vmem:[%s775_s1 + $0x168] sm:$0xff] }
   0x3   :  { %221 = vmatpush.msra.mxu2 %v79_v1  ;;  %v63_v3 = vld [vmem:[%s775_s1 + $0xf8] sm:$0xff]  ;;  %v62_v7 = vld [vmem:[%s775_s1 + $0xf0] sm:$0xff]  ;;  %v61_v10 = vld [vmem:[%s775_s1 + $0xe8] sm:$0xff] }
   0x4   :  { %v95_v5 = vld [vmem:[%s775_s1 + $0x1f8] sm:$0xff]  ;;  %201 = vmatpush.msra.mxu1 %v63_v3  ;;  %182 = vmatpush.msra.mxu0 %v46_v2  ;;  %v94_v9 = vld [vmem:[%s775_s1 + $0x1f0] sm:$0xff]  ;;  %v44_v11 = vld [vmem:[%s775_s1 + $0x60] sm:$0xff] }
   0x5   :  { %241 = vmatpush.msra.mxu3 %v95_v5  ;;  %222 = vmatpush.msra.mxu2 %v78_v4  ;;  %v76_v12 = vld [vmem:[%s775_s1 + $0x160] sm:$0xff]  ;;  %v93_v13 = vld [vmem:[%s775_s1 + $0x1e8] sm:$0xff]  ;;  %v43_v16 = vld [vmem:[%s775_s1 + $0x58] sm:$0xff] }
   0x6   :  { %202 = vmatpush.msra.mxu1 %v62_v7  ;;  %183 = vmatpush.msra.mxu0 %v45_v6  ;;  %v60_v14 = vld [vmem:[%s775_s1 + $0xe0] sm:$0xff]  ;;  %v75_v17 = vld [vmem:[%s775_s1 + $0x158] sm:$0xff]  ;;  %v42_v20 = vld [vmem:[%s775_s1 + $0x50] sm:$0xff] }
   0x7   :  { %242 = vmatpush.msra.mxu3 %v94_v9  ;;  %223 = vmatpush.msra.mxu2 %v77_v8  ;;  %v92_v15 = vld [vmem:[%s775_s1 + $0x1e0] sm:$0xff]  ;;  %v59_v18 = vld [vmem:[%s775_s1 + $0xd8] sm:$0xff]  ;;  %v74_v21 = vld [vmem:[%s775_s1 + $0x150] sm:$0xff] }
   0x8   :  { %203 = vmatpush.msra.mxu1 %v61_v10  ;;  %184 = vmatpush.msra.mxu0 %v44_v11  ;;  %v91_v19 = vld [vmem:[%s775_s1 + $0x1d8] sm:$0xff]  ;;  %v58_v22 = vld [vmem:[%s775_s1 + $0xd0] sm:$0xff]  ;;  %v41_v24 = vld [vmem:[%s775_s1 + $0x48] sm:$0xff] }
   0x9   :  { %243 = vmatpush.msra.mxu3 %v93_v13  ;;  %224 = vmatpush.msra.mxu2 %v76_v12  ;;  %v90_v23 = vld [vmem:[%s775_s1 + $0x1d0] sm:$0xff]  ;;  %v73_v25 = vld [vmem:[%s775_s1 + $0x148] sm:$0xff]  ;;  %v40_v28 = vld [vmem:[%s775_s1 + $0x40] sm:$0xff] }
   0xa   :  { %204 = vmatpush.msra.mxu1 %v60_v14  ;;  %185 = vmatpush.msra.mxu0 %v43_v16  ;;  %v57_v26 = vld [vmem:[%s775_s1 + $0xc8] sm:$0xff]  ;;  %v72_v29 = vld [vmem:[%s775_s1 + $0x140] sm:$0xff]  ;;  %v39_v32 = vld [vmem:[%s775_s1 + $0x38] sm:$0xff] }
   0xb   :  { %244 = vmatpush.msra.mxu3 %v92_v15  ;;  %225 = vmatpush.msra.mxu2 %v75_v17  ;;  %v89_v27 = vld [vmem:[%s775_s1 + $0x1c8] sm:$0xff]  ;;  %v56_v30 = vld [vmem:[%s775_s1 + $0xc0] sm:$0xff]  ;;  %v71_v33 = vld [vmem:[%s775_s1 + $0x138] sm:$0xff] }
   0xc   :  { %205 = vmatpush.msra.mxu1 %v59_v18  ;;  %186 = vmatpush.msra.mxu0 %v42_v20  ;;  %v88_v31 = vld [vmem:[%s775_s1 + $0x1c0] sm:$0xff]  ;;  %v55_v34 = vld [vmem:[%s775_s1 + $0xb8] sm:$0xff]  ;;  %v38_v36 = vld [vmem:[%s775_s1 + $0x30] sm:$0xff] }
   0xd   :  { %245 = vmatpush.msra.mxu3 %v91_v19  ;;  %226 = vmatpush.msra.mxu2 %v74_v21  ;;  %v87_v35 = vld [vmem:[%s775_s1 + $0x1b8] sm:$0xff]  ;;  %v70_v37 = vld [vmem:[%s775_s1 + $0x130] sm:$0xff]  ;;  %v37_v40 = vld [vmem:[%s775_s1 + $0x28] sm:$0xff] }
   0xe   :  { %206 = vmatpush.msra.mxu1 %v58_v22  ;;  %187 = vmatpush.msra.mxu0 %v41_v24  ;;  %v54_v38 = vld [vmem:[%s775_s1 + $0xb0] sm:$0xff]  ;;  %v69_v41 = vld [vmem:[%s775_s1 + $0x128] sm:$0xff]  ;;  %v36_v44 = vld [vmem:[%s775_s1 + $0x20] sm:$0xff] }
   0xf   :  { %246 = vmatpush.msra.mxu3 %v90_v23  ;;  %227 = vmatpush.msra.mxu2 %v73_v25  ;;  %v86_v39 = vld [vmem:[%s775_s1 + $0x1b0] sm:$0xff]  ;;  %v53_v42 = vld [vmem:[%s775_s1 + $0xa8] sm:$0xff]  ;;  %v68_v45 = vld [vmem:[%s775_s1 + $0x120] sm:$0xff] }
  0x10   :  { %207 = vmatpush.msra.mxu1 %v57_v26  ;;  %188 = vmatpush.msra.mxu0 %v40_v28  ;;  %v85_v43 = vld [vmem:[%s775_s1 + $0x1a8] sm:$0xff]  ;;  %v52_v46 = vld [vmem:[%s775_s1 + $0xa0] sm:$0xff]  ;;  %v35_v48 = vld [vmem:[%s775_s1 + $0x18] sm:$0xff] }
  0x11   :  { %247 = vmatpush.msra.mxu3 %v89_v27  ;;  %228 = vmatpush.msra.mxu2 %v72_v29  ;;  %v84_v47 = vld [vmem:[%s775_s1 + $0x1a0] sm:$0xff]  ;;  %v67_v49 = vld [vmem:[%s775_s1 + $0x118] sm:$0xff]  ;;  %v34_v52 = vld [vmem:[%s775_s1 + $0x10] sm:$0xff] }
  0x12   :  { %208 = vmatpush.msra.mxu1 %v56_v30  ;;  %189 = vmatpush.msra.mxu0 %v39_v32  ;;  %v51_v50 = vld [vmem:[%s775_s1 + $0x98] sm:$0xff]  ;;  %v66_v53 = vld [vmem:[%s775_s1 + $0x110] sm:$0xff]  ;;  %v33_v56 = vld [vmem:[%s775_s1 + $0x8] sm:$0xff] }
  0x13   :  { %248 = vmatpush.msra.mxu3 %v88_v31  ;;  %229 = vmatpush.msra.mxu2 %v71_v33  ;;  %v83_v51 = vld [vmem:[%s775_s1 + $0x198] sm:$0xff]  ;;  %v50_v54 = vld [vmem:[%s775_s1 + $0x90] sm:$0xff]  ;;  %v65_v57 = vld [vmem:[%s775_s1 + $0x108] sm:$0xff] }
  0x14   :  { %209 = vmatpush.msra.mxu1 %v55_v34  ;;  %190 = vmatpush.msra.mxu0 %v38_v36  ;;  %v82_v55 = vld [vmem:[%s775_s1 + $0x190] sm:$0xff]  ;;  %v49_v58 = vld [vmem:[%s775_s1 + $0x88] sm:$0xff]  ;;  %v32_v60 = vld [vmem:[%s775_s1] sm:$0xff] }
  0x15   :  { %249 = vmatpush.msra.mxu3 %v87_v35  ;;  %230 = vmatpush.msra.mxu2 %v70_v37  ;;  %v81_v59 = vld [vmem:[%s775_s1 + $0x188] sm:$0xff]  ;;  %v64_v61 = vld [vmem:[%s775_s1 + $0x100] sm:$0xff]  ;;  %v111_v62 = vld [vmem:[%s775_s1 + $0x278] sm:$0xff] }
  0x16   :  { %210 = vmatpush.msra.mxu1 %v54_v38  ;;  %191 = vmatpush.msra.mxu0 %v37_v40  ;;  %v143_v63 = vld [vmem:[%s775_s1 + $0x378] sm:$0xff]  ;;  %v48_v0 = vld [vmem:[%s775_s1 + $0x80] sm:$0xff]  ;;  %v110_v2 = vld [vmem:[%s775_s1 + $0x270] sm:$0xff] }
  0x17   :  { %250 = vmatpush.msra.mxu3 %v86_v39  ;;  %231 = vmatpush.msra.mxu2 %v69_v41  ;;  %v80_v1 = vld [vmem:[%s775_s1 + $0x180] sm:$0xff]  ;;  %v127_v3 = vld [vmem:[%s775_s1 + $0x2f8] sm:$0xff]  ;;  %v142_v4 = vld [vmem:[%s775_s1 + $0x370] sm:$0xff] }
  0x18   :  { %211 = vmatpush.msra.mxu1 %v53_v42  ;;  %192 = vmatpush.msra.mxu0 %v36_v44  ;;  %v159_v5 = vld [vmem:[%s775_s1 + $0x3f8] sm:$0xff]  ;;  %v109_v6 = vld [vmem:[%s775_s1 + $0x268] sm:$0xff]  ;;  %v126_v7 = vld [vmem:[%s775_s1 + $0x2f0] sm:$0xff] }
  0x19   :  { %251 = vmatpush.msra.mxu3 %v85_v43  ;;  %232 = vmatpush.msra.mxu2 %v68_v45  ;;  %v141_v8 = vld [vmem:[%s775_s1 + $0x368] sm:$0xff]  ;;  %v158_v9 = vld [vmem:[%s775_s1 + $0x3f0] sm:$0xff]  ;;  %v108_v10 = vld [vmem:[%s775_s1 + $0x260] sm:$0xff] }
  0x1a   :  { %212 = vmatpush.msra.mxu1 %v52_v46  ;;  %193 = vmatpush.msra.mxu0 %v35_v48  ;;  %v125_v11 = vld [vmem:[%s775_s1 + $0x2e8] sm:$0xff]  ;;  %v29_v12 = vld [vmem:[%s776_s0] sm:$0xff]  ;;  %v107_v15 = vld [vmem:[%s775_s1 + $0x258] sm:$0xff] }
  0x1b   :  { %252 = vmatpush.msra.mxu3 %v84_v47  ;;  %233 = vmatpush.msra.mxu2 %v67_v49  ;;  %v140_v13 = vld [vmem:[%s775_s1 + $0x360] sm:$0xff]  ;;  %v157_v14 = vld [vmem:[%s775_s1 + $0x3e8] sm:$0xff]  ;;  %162 = vst [vmem:[#allocation1] ss:$4 sm:$0xff] %v29_v12  ;;  %v139_v17 = vld [vmem:[%s775_s1 + $0x358] sm:$0xff] }
  0x1c   :  { %213 = vmatpush.msra.mxu1 %v51_v50  ;;  %194 = vmatpush.msra.mxu0 %v34_v52  ;;  %v124_v16 = vld [vmem:[%s775_s1 + $0x2e0] sm:$0xff]  ;;  %v106_v19 = vld [vmem:[%s775_s1 + $0x250] sm:$0xff]  ;;  %v123_v20 = vld [vmem:[%s775_s1 + $0x2d8] sm:$0xff] }
  0x1d   :  { %253 = vmatpush.msra.mxu3 %v83_v51  ;;  %234 = vmatpush.msra.mxu2 %v66_v53  ;;  %v156_v18 = vld [vmem:[%s775_s1 + $0x3e0] sm:$0xff]  ;;  %v138_v21 = vld [vmem:[%s775_s1 + $0x350] sm:$0xff]  ;;  %v155_v22 = vld [vmem:[%s775_s1 + $0x3d8] sm:$0xff] }
  0x1e   :  { %214 = vmatpush.msra.mxu1 %v50_v54  ;;  %195 = vmatpush.msra.mxu0 %v33_v56  ;;  %v105_v23 = vld [vmem:[%s775_s1 + $0x248] sm:$0xff]  ;;  %v122_v24 = vld [vmem:[%s775_s1 + $0x2d0] sm:$0xff]  ;;  %v104_v28 = vld [vmem:[%s775_s1 + $0x240] sm:$0xff] }
  0x1f   :  { %254 = vmatpush.msra.mxu3 %v82_v55  ;;  %235 = vmatpush.msra.mxu2 %v65_v57  ;;  %v137_v25 = vld [vmem:[%s775_s1 + $0x348] sm:$0xff]  ;;  %v154_v26 = vld [vmem:[%s775_s1 + $0x3d0] sm:$0xff]  ;;  %v136_v30 = vld [vmem:[%s775_s1 + $0x340] sm:$0xff] }
  0x20   :  { %215 = vmatpush.msra.mxu1 %v49_v58  ;;  %196 = vmatpush.msra.mxu0 %v32_v60  ;;  %v30_v27 = vld [vmem:[%s776_s0 + $0x8] sm:$0xff]  ;;  %v103_v32 = vld [vmem:[%s775_s1 + $0x238] sm:$0xff]  ;;  %v120_v33 = vld [vmem:[%s775_s1 + $0x2c0] sm:$0xff] }
  0x21   :  { %255 = vmatpush.msra.mxu3 %v81_v59  ;;  %236 = vmatpush.msra.mxu2 %v64_v61  ;;  %v121_v29 = vld [vmem:[%s775_s1 + $0x2c8] sm:$0xff]  ;;  %164 = vst [vmem:[#allocation1 + $0x20] ss:$4 sm:$0xff] %v30_v27  ;;  %v135_v34 = vld [vmem:[%s775_s1 + $0x338] sm:$0xff]  ;;  %v152_v35 = vld [vmem:[%s775_s1 + $0x3c0] sm:$0xff] }
  0x22   :  { %261 = vmatpush.msrb.mxu0 %v111_v62  ;;  %216 = vmatpush.msra.mxu1 %v48_v0  ;;  %v153_v31 = vld [vmem:[%s775_s1 + $0x3c8] sm:$0xff]  ;;  %v102_v36 = vld [vmem:[%s775_s1 + $0x230] sm:$0xff]  ;;  %v119_v37 = vld [vmem:[%s775_s1 + $0x2b8] sm:$0xff] }
  0x23   :  { %301 = vmatpush.msrb.mxu2 %v143_v63  ;;  %256 = vmatpush.msra.mxu3 %v80_v1  ;;  %v134_v38 = vld [vmem:[%s775_s1 + $0x330] sm:$0xff]  ;;  %v151_v39 = vld [vmem:[%s775_s1 + $0x3b8] sm:$0xff]  ;;  %v101_v40 = vld [vmem:[%s775_s1 + $0x228] sm:$0xff] }
  0x24   :  { %262 = vmatpush.msrb.mxu0 %v110_v2  ;;  %281 = vmatpush.msrb.mxu1 %v127_v3  ;;  %v118_v41 = vld [vmem:[%s775_s1 + $0x2b0] sm:$0xff]  ;;  %v133_v42 = vld [vmem:[%s775_s1 + $0x328] sm:$0xff]  ;;  %v100_v45 = vld [vmem:[%s775_s1 + $0x220] sm:$0xff] }
  0x25   :  { %302 = vmatpush.msrb.mxu2 %v142_v4  ;;  %321 = vmatpush.msrb.mxu3 %v159_v5  ;;  %v150_v43 = vld [vmem:[%s775_s1 + $0x3b0] sm:$0xff]  ;;  %v117_v46 = vld [vmem:[%s775_s1 + $0x2a8] sm:$0xff]  ;;  %v132_v47 = vld [vmem:[%s775_s1 + $0x320] sm:$0xff] }
  0x26   :  { %263 = vmatpush.msrb.mxu0 %v109_v6  ;;  %282 = vmatpush.msrb.mxu1 %v126_v7  ;;  %v167_v44 = vld.sshfl [vmem:[#allocation1 + $0x10] sm:$0xff pattern:$0x73625140]  ;;  %v149_v48 = vld [vmem:[%s775_s1 + $0x3a8] sm:$0xff]  ;;  %v99_v51 = vld [vmem:[%s775_s1 + $0x218] sm:$0xff] }
  0x27   :  { %303 = vmatpush.msrb.mxu2 %v141_v8  ;;  %322 = vmatpush.msrb.mxu3 %v158_v9  ;;  %v165_v49 = vld.sshfl [vmem:[#allocation1] sm:$0xff pattern:$0x73625140]  ;;  %v168_v50 = vld.sshfl [vmem:[#allocation1 + $0x18] sm:$0xff pattern:$0x73625140] }
  0x28   :  { %264 = vmatpush.msrb.mxu0 %v108_v10  ;;  %283 = vmatpush.msrb.mxu1 %v125_v11  ;;  %v116_v52 = vld [vmem:[%s775_s1 + $0x2a0] sm:$0xff]  ;;  %v131_v53 = vld [vmem:[%s775_s1 + $0x318] sm:$0xff]  ;;  %v166_v55 = vld.sshfl [vmem:[#allocation1 + $0x8] sm:$0xff pattern:$0x73625140] }
  0x29   :  { %304 = vmatpush.msrb.mxu2 %v140_v13  ;;  %323 = vmatpush.msrb.mxu3 %v157_v14  ;;  %v148_v54 = vld [vmem:[%s775_s1 + $0x3a0] sm:$0xff]  ;;  %v98_v56 = vld [vmem:[%s775_s1 + $0x210] sm:$0xff]  ;;  %v115_v57 = vld [vmem:[%s775_s1 + $0x298] sm:$0xff] }
  0x2a   :  { %265 = vmatpush.msrb.mxu0 %v107_v15  ;;  %284 = vmatpush.msrb.mxu1 %v124_v16  ;;  %v130_v58 = vld [vmem:[%s775_s1 + $0x310] sm:$0xff]  ;;  %v147_v59 = vld [vmem:[%s775_s1 + $0x398] sm:$0xff]  ;;  %v97_v60 = vld [vmem:[%s775_s1 + $0x208] sm:$0xff] }
  0x2b   :  { %305 = vmatpush.msrb.mxu2 %v139_v17  ;;  %324 = vmatpush.msrb.mxu3 %v156_v18  ;;  %v114_v61 = vld [vmem:[%s775_s1 + $0x290] sm:$0xff]  ;;  %v129_v62 = vld [vmem:[%s775_s1 + $0x308] sm:$0xff]  ;;  %v96_v0 = vld [vmem:[%s775_s1 + $0x200] sm:$0xff] }
  0x2c   :  { %266 = vmatpush.msrb.mxu0 %v106_v19  ;;  %285 = vmatpush.msrb.mxu1 %v123_v20  ;;  %v146_v63 = vld [vmem:[%s775_s1 + $0x390] sm:$0xff]  ;;  %v113_v1 = vld [vmem:[%s775_s1 + $0x288] sm:$0xff]  ;;  %v128_v2 = vld [vmem:[%s775_s1 + $0x300] sm:$0xff] }
  0x2d   :  { %306 = vmatpush.msrb.mxu2 %v138_v21  ;;  %325 = vmatpush.msrb.mxu3 %v155_v22  ;;  %v145_v3 = vld [vmem:[%s775_s1 + $0x388] sm:$0xff]  ;;  %v169_v4 = vld.sshfl [vmem:[#allocation1 + $0x20] sm:$0xff pattern:$0x73625140] }
  0x2e   :  { %267 = vmatpush.msrb.mxu0 %v105_v23  ;;  %286 = vmatpush.msrb.mxu1 %v122_v24  ;;  %v171_v5 = vld.sshfl [vmem:[#allocation1 + $0x30] sm:$0xff pattern:$0x73625140]  ;;  %v112_v6 = vld [vmem:[%s775_s1 + $0x280] sm:$0xff] }
  0x2f   :  { %307 = vmatpush.msrb.mxu2 %v137_v25  ;;  %326 = vmatpush.msrb.mxu3 %v154_v26  ;;  %v144_v7 = vld [vmem:[%s775_s1 + $0x380] sm:$0xff]  ;;  %v170_v8 = vld.sshfl [vmem:[#allocation1 + $0x28] sm:$0xff pattern:$0x73625140] }
  0x30   :  { %268 = vmatpush.msrb.mxu0 %v104_v28  ;;  %287 = vmatpush.msrb.mxu1 %v121_v29  ;;  %v172_v9 = vld.sshfl [vmem:[#allocation1 + $0x38] sm:$0xff pattern:$0x73625140]  ;;  %v350_v10 = vld [vmem:[%s777_s2] ss:$0 sm:$0xff] }
  0x31   :  { %308 = vmatpush.msrb.mxu2 %v136_v30  ;;  %327 = vmatpush.msrb.mxu3 %v153_v31  ;;  %23 = vst.msk [vmem:[%s778_s3] sm:$0x3] %vm22_vm0, %v350_v10 }
  0x32   :  { %269 = vmatpush.msrb.mxu0 %v103_v32  ;;  %288 = vmatpush.msrb.mxu1 %v120_v33 }
  0x33   :  { %309 = vmatpush.msrb.mxu2 %v135_v34  ;;  %328 = vmatpush.msrb.mxu3 %v152_v35 }
  0x34   :  { %270 = vmatpush.msrb.mxu0 %v102_v36  ;;  %289 = vmatpush.msrb.mxu1 %v119_v37 }
  0x35   :  { %310 = vmatpush.msrb.mxu2 %v134_v38  ;;  %329 = vmatpush.msrb.mxu3 %v151_v39 }
  0x36   :  { %271 = vmatpush.msrb.mxu0 %v101_v40  ;;  %290 = vmatpush.msrb.mxu1 %v118_v41 }
  0x37   :  { %311 = vmatpush.msrb.mxu2 %v133_v42  ;;  %330 = vmatpush.msrb.mxu3 %v150_v43 }
  0x38   :  { %237 = vmatmul.f32.vlgmr.msra.gmra.mxu2 %v167_v44  ;;  %272 = vmatpush.msrb.mxu0 %v100_v45  ;;  %v31_v24 = vld [vmem:[%s778_s3] sm:$0x3] }
  0x39   :  { %291 = vmatpush.msrb.mxu1 %v117_v46  ;;  %312 = vmatpush.msrb.mxu2 %v132_v47 }
  0x3a   :  { %331 = vmatpush.msrb.mxu3 %v149_v48  ;;  %197 = vmatmul.f32.vlgmr.msra.gmra.mxu0 %v165_v49 }
  0x3b   :  { %257 = vmatmul.f32.vlgmr.msra.gmra.mxu3 %v168_v50  ;;  %273 = vmatpush.msrb.mxu0 %v99_v51 }
  0x3c   :  { %292 = vmatpush.msrb.mxu1 %v116_v52  ;;  %313 = vmatpush.msrb.mxu2 %v131_v53 }
  0x3d   :  { %332 = vmatpush.msrb.mxu3 %v148_v54  ;;  %217 = vmatmul.f32.vlgmr.msra.gmra.mxu1 %v166_v55 }
  0x3e   :  { %274 = vmatpush.msrb.mxu0 %v98_v56  ;;  %293 = vmatpush.msrb.mxu1 %v115_v57 }
  0x3f   :  { %314 = vmatpush.msrb.mxu2 %v130_v58  ;;  %333 = vmatpush.msrb.mxu3 %v147_v59 }
  0x40   :  { %275 = vmatpush.msrb.mxu0 %v97_v60  ;;  %294 = vmatpush.msrb.mxu1 %v114_v61 }
  0x41   :  { %315 = vmatpush.msrb.mxu2 %v129_v62  ;;  %334 = vmatpush.msrb.mxu3 %v146_v63 }
  0x42   :  { %276 = vmatpush.msrb.mxu0 %v96_v0  ;;  %295 = vmatpush.msrb.mxu1 %v113_v1 }
  0x43   :  { %316 = vmatpush.msrb.mxu2 %v128_v2  ;;  %335 = vmatpush.msrb.mxu3 %v145_v3 }
  0x44   :  { %277 = vmatmul.f32.vlgmr.msrb.gmra.mxu0 %v169_v4  ;;  %317 = vmatmul.f32.vlgmr.msrb.gmra.mxu2 %v171_v5 }
  0x45   :  { %296 = vmatpush.msrb.mxu1 %v112_v6  ;;  %336 = vmatpush.msrb.mxu3 %v144_v7 }
  0x46   :  { %297 = vmatmul.f32.vlgmr.msrb.gmra.mxu1 %v170_v8  ;;  %337 = vmatmul.f32.vlgmr.msrb.gmra.mxu3 %v172_v9 }
  0xb7   :  { %v198_v11 = vpop.f32.mrf.mxu0 }
  0xba   :  { %v218_v12 = vpop.f32.mrf.mxu1 }
  0xbb   :  { %v219_v13 = vadd.f32 %v218_v12, %v198_v11  ;;  %v238_v14 = vpop.f32.mrf.mxu2 }
  0xbd   :  { %v239_v15 = vadd.f32 %v238_v14, %v219_v13 }
  0xbe   :  { %v258_v16 = vpop.f32.mrf.mxu3 }
  0xbf   :  { %v259_v17 = vadd.f32 %v258_v16, %v239_v15 }
  0xc1   :  { %v278_v18 = vpop.f32.mrf.mxu0 }
  0xc2   :  { %v279_v19 = vadd.f32 %v278_v18, %v259_v17 }
  0xc3   :  { %v298_v20 = vpop.f32.mrf.mxu1 }
  0xc4   :  { %v299_v21 = vadd.f32 %v298_v20, %v279_v19 }
  0xc7   :  { %v318_v22 = vpop.f32.mrf.mxu2 }
  0xc8   :  { %v319_v23 = vadd.f32 %v318_v22, %v299_v21 }
  0xc9   :  { %v338_v25 = vpop.f32.mrf.mxu3 }
  0xca   :  { %v339_v26 = vadd.f32 %v338_v25, %v319_v23 }
  0xcc   :  { %v341_v27 = vadd.f32 %v339_v26, %v31_v24 }
  0xce   :  { %343 = vst.msk [vmem:[%s778_s3] sm:$0x3] %vm22_vm0, %v341_v27 }

</bundles_post_ra>
